<compile_context>
chip_gen: v6e
topology: v6e:2x2x1
jax: 0.10.0
libtpu: 0.0.40
codegen_flags: <defaults>
</compile_context>

<pallas_src>
import functools

import jax
import jax.numpy as jnp
from jax.experimental import pallas as pl
from jax.experimental.pallas import tpu as pltpu

_MIB = 1024 * 1024


def _head_kernel(x_ref, w_ref, b_ref, o_ref):
    # x_ref: (block_b, K)  w_ref: (K, N)  b_ref: (1, N)  o_ref: (block_b, N)
    y = jnp.dot(x_ref[...], w_ref[...], preferred_element_type=jnp.float32)
    y = y + b_ref[...].astype(jnp.float32)
    o_ref[...] = jax.nn.sigmoid(y).astype(o_ref.dtype)


def prepare_head_params(weight, bias, param_dtype=jnp.float32):
    """One-time parameter prep (hoisted out of the per-call hot path).

    weight: (out_features, in_features)  -- PyTorch nn.Linear layout
    bias:   (out_features,)
    param_dtype: dtype of the resident weight (jnp.bfloat16 halves resident
        VMEM and HBM weight traffic; kernel accumulation stays f32).
    Returns (weight_t, bias_2d) with weight_t: (in_features, out_features).
    """
    n, _ = weight.shape
    weight_t = jnp.asarray(weight).T.astype(param_dtype)
    bias_2d = jnp.asarray(bias).astype(jnp.float32).reshape(1, n)
    return weight_t, bias_2d


def _round_up(v, m):
    return ((v + m - 1) // m) * m


def _physical_vmem_bytes():
    try:
        return int(pltpu.get_tpu_info().vmem_capacity_bytes)
    except Exception:
        return 64 * _MIB  # conservative (v7x per-TC VMEM); v5e/v6e have 128 MiB


def _plan_tiles(B, K, N, x_bytes, w_bytes, out_bytes):
    """Pick (block_b, vmem_limit_bytes) from a layout-aware VMEM model.

    All tile footprints are padded to the (8, 128) sublane/lane layout before
    being counted, so the estimate tracks what Mosaic actually allocates.
    """
    phys = _physical_vmem_bytes()
    # Generation-aware streamed-tile budget (v5e/v6e: 28 MiB, v7x: 16 MiB).
    budget = min(phys // 4, 28 * _MIB)

    k_pad = _round_up(K, 128)
    n_pad = _round_up(N, 128)

    # VMEM-resident operands (constant index_map; single buffer via pl.Buffered(1)).
    resident = k_pad * n_pad * w_bytes + 8 * n_pad * 4  # weight + f32 bias row

    # If the resident weight alone eats the budget, raise the scoped limit
    # (physical VMEM is far larger) instead of collapsing the streamed tile.
    budget = max(budget, resident + 4 * _MIB)
    budget = min(budget, max(phys - 16 * _MIB, resident + 2 * _MIB))

    # Streamed tiles: x and out, double-buffered by the default pipeline.
    per_row = 2 * k_pad * x_bytes + 2 * n_pad * out_bytes
    max_rows = max(8, (budget - resident) // per_row)

    # Byte-targeted streamed tile: aim for ~2 MiB of x per grid step so the
    # ~0.35 us/step overhead is negligible vs. the DMA time even for small K.
    target_rows = max(8, (2 * _MIB) // (k_pad * x_bytes))

    block_b = int(min(max_rows, target_rows))
    # Keep >= 2 grid steps when B is large enough so both v7x TensorCores get work.
    block_b = min(block_b, _round_up(pl.cdiv(B, 2), 8))
    block_b = min(block_b, _round_up(B, 8))
    block_b = max(8, (block_b // 8) * 8)

    footprint = resident + block_b * per_row
    # Never lower below the default scoped limits; raise when the plan needs it.
    vmem_limit = int(min(phys - 8 * _MIB, max(32 * _MIB, footprint + 8 * _MIB)))
    return block_b, vmem_limit


def _build_in_specs(block_b, K, N, single_buffer_resident):
    resident_kwargs = {}
    if single_buffer_resident and hasattr(pl, "Buffered"):
        # Constant index_map blocks never re-fetch; one buffer is enough.
        resident_kwargs = dict(pipeline_mode=pl.Buffered(1))
    return [
        # Streamed batch tiles of x (default double-buffered pipeline; sweep
        # pl.Buffered(3) only if a trace shows exposed DMA per step).
        pl.BlockSpec((block_b, K), lambda i: (i, 0)),
        # Weight / bias stay VMEM-resident across all grid steps.
        pl.BlockSpec((K, N), lambda i: (0, 0), **resident_kwargs),
        pl.BlockSpec((1, N), lambda i: (0, 0), **resident_kwargs),
    ]


@functools.partial(
    jax.jit, static_argnames=("block_b", "vmem_limit", "single_buffer_resident"))
def _forward(x, weight_t, bias_2d, *, block_b, vmem_limit, single_buffer_resident):
    B, K = x.shape
    K2, N = weight_t.shape
    assert K == K2 and bias_2d.shape == (1, N)
    grid = (pl.cdiv(B, block_b),)
    return pl.pallas_call(
        _head_kernel,
        out_shape=jax.ShapeDtypeStruct((B, N), x.dtype),
        grid=grid,
        in_specs=_build_in_specs(block_b, K, N, single_buffer_resident),
        out_specs=pl.BlockSpec((block_b, N), lambda i: (i, 0)),
        compiler_params=pltpu.CompilerParams(
            dimension_semantics=("parallel",),   # shard batch across TCs (v7x)
            vmem_limit_bytes=vmem_limit,
        ),
    )(x, weight_t, bias_2d)


def classification_head(x, weight_t, bias_2d, training=False):
    """sigmoid(dropout(x) @ weight_t + bias) with eval-mode dropout (identity).

    x:        (B, in_features)               (f32 or bf16)
    weight_t: (in_features, out_features)    (pre-transposed via prepare_head_params)
    bias_2d:  (1, out_features)              (f32)
    """
    if training:
        # TODO(synk): implement training-mode dropout with pltpu.prng_* if ever needed.
        raise NotImplementedError("training-mode dropout not implemented")

    B, K = x.shape
    K2, N = weight_t.shape
    assert K == K2

    block_b, vmem_limit = _plan_tiles(
        B, K, N,
        x_bytes=x.dtype.itemsize,
        w_bytes=weight_t.dtype.itemsize,
        out_bytes=x.dtype.itemsize,
    )
    try:
        return _forward(x, weight_t, bias_2d, block_b=block_b,
                        vmem_limit=vmem_limit, single_buffer_resident=True)
    except Exception:
        # Fallback if this Pallas build rejects pl.Buffered(1) on a pallas_call
        # BlockSpec; costs one extra (K, N) weight buffer of VMEM, nothing else.
        return _forward(x, weight_t, bias_2d, block_b=block_b,
                        vmem_limit=vmem_limit, single_buffer_resident=False)


if __name__ == "__main__":
    key = jax.random.PRNGKey(0)
    k_x, k_w, k_b = jax.random.split(key, 3)

    batch = 8
    in_features = 32
    out_features = 16

    # Deterministic parameter init, matching nn.Linear's U(-1/sqrt(K), 1/sqrt(K))
    bound = 1.0 / (in_features ** 0.5)
    weight = jax.random.uniform(
        k_w, (out_features, in_features), jnp.float32, -bound, bound)
    bias = jax.random.uniform(
        k_b, (out_features,), jnp.float32, -bound, bound)

    x = jax.random.normal(k_x, (batch, in_features), jnp.float32)

    # Reference in plain JAX (eval-mode dropout == identity).
    ref = jax.nn.sigmoid(x @ weight.T + bias)

    # f32 path.
    weight_t, bias_2d = prepare_head_params(weight, bias)
    out = jax.block_until_ready(classification_head(x, weight_t, bias_2d))
    assert out.shape == (batch, out_features)
    assert jnp.allclose(out, ref, atol=1e-5, rtol=1e-5)

    # bf16 streaming path (halves x/weight HBM reads; f32 accumulation + epilogue).
    weight_t_bf, bias_2d_bf = prepare_head_params(
        weight, bias, param_dtype=jnp.bfloat16)
    out_bf = jax.block_until_ready(
        classification_head(x.astype(jnp.bfloat16), weight_t_bf, bias_2d_bf))
    assert out_bf.shape == (batch, out_features)
    assert jnp.allclose(out_bf.astype(jnp.float32), ref, atol=2e-2, rtol=2e-2)

    print("KERNEL_OK")
</pallas_src>

<mosaic_0001>
module attributes {stable_mosaic.version = 11 : i64} {
  func.func @_head_kernel(%arg0: i32, %arg1: memref<8x32xf32, #tpu.memory_space<vmem>>, %arg2: memref<32x16xf32, #tpu.memory_space<vmem>>, %arg3: memref<1x16xf32, #tpu.memory_space<vmem>>, %arg4: memref<8x16xf32, #tpu.memory_space<vmem>>) attributes {dimension_semantics = [#tpu.dimension_semantics<parallel>], iteration_bounds = array<i64: 1>, scalar_prefetch = 0 : i64, scratch_operands = 0 : i64, tpu.core_type = #tpu.core_type<tc>, window_params = [{transform_indices = @transform_0, window_bounds = array<i64: 8, 32>}, {pipeline_mode = #tpu.pipeline_mode<synchronous>, transform_indices = @transform_1, window_bounds = array<i64: 32, 16>}, {pipeline_mode = #tpu.pipeline_mode<synchronous>, transform_indices = @transform_2, window_bounds = array<i64: 1, 16>}, {transform_indices = @transform_3, window_bounds = array<i64: 8, 16>}]} {
    %c0 = arith.constant 0 : index
    %c0_0 = arith.constant 0 : index
    %0 = vector.load %arg1[%c0, %c0_0] : memref<8x32xf32, #tpu.memory_space<vmem>>, vector<8x32xf32>
    %c0_1 = arith.constant 0 : index
    %c0_2 = arith.constant 0 : index
    %1 = vector.load %arg2[%c0_1, %c0_2] : memref<32x16xf32, #tpu.memory_space<vmem>>, vector<32x16xf32>
    %cst = arith.constant dense<0.000000e+00> : vector<8x16xf32>
    %2 = tpu.matmul %0, %1, %cst {dimension_numbers = #tpu.dot_dimension_numbers<[1], [0], [0], [1], [0, 0, 1, 1], [], []>} : vector<8x32xf32>, vector<32x16xf32>, vector<8x16xf32> -> vector<8x16xf32>
    %c0_3 = arith.constant 0 : index
    %c0_4 = arith.constant 0 : index
    %3 = vector.load %arg3[%c0_3, %c0_4] : memref<1x16xf32, #tpu.memory_space<vmem>>, vector<1x16xf32>
    %4 = vector.broadcast %3 : vector<1x16xf32> to vector<8x16xf32>
    %5 = arith.addf %2, %4 : vector<8x16xf32>
    %6 = arith.negf %5 : vector<8x16xf32>
    %7 = math.exp %6 : vector<8x16xf32>
    %cst_5 = arith.constant 1.000000e+00 : f32
    %8 = vector.broadcast %cst_5 : f32 to vector<8x16xf32>
    %9 = arith.addf %8, %7 : vector<8x16xf32>
    %10 = arith.divf %8, %9 : vector<8x16xf32>
    %c0_6 = arith.constant 0 : index
    %c0_7 = arith.constant 0 : index
    %11 = vector.load %arg4[%c0_6, %c0_7] : memref<8x16xf32, #tpu.memory_space<vmem>>, vector<8x16xf32>
    tpu.vector_store %arg4[%c0_6, %c0_7], %10 {strides = array<i32>} : memref<8x16xf32, #tpu.memory_space<vmem>>, vector<8x16xf32>,
    return
  }
  func.func @transform_0(%arg0: i32) -> (i32, i32) {
    %c0_i32 = arith.constant 0 : i32
    %c0_i32_0 = arith.constant 0 : i32
    return %arg0, %c0_i32 : i32, i32
  }
  func.func @transform_1(%arg0: i32) -> (i32, i32) {
    %c0_i32 = arith.constant 0 : i32
    %c0_i32_0 = arith.constant 0 : i32
    %c0_i32_1 = arith.constant 0 : i32
    return %c0_i32, %c0_i32_0 : i32, i32
  }
  func.func @transform_2(%arg0: i32) -> (i32, i32) {
    %c0_i32 = arith.constant 0 : i32
    %c0_i32_0 = arith.constant 0 : i32
    %c0_i32_1 = arith.constant 0 : i32
    return %c0_i32, %c0_i32_0 : i32, i32
  }
  func.func @transform_3(%arg0: i32) -> (i32, i32) {
    %c0_i32 = arith.constant 0 : i32
    %c0_i32_0 = arith.constant 0 : i32
    return %arg0, %c0_i32 : i32, i32
  }
}

module attributes {stable_mosaic.version = 11 : i64} {
  func.func @_head_kernel(%arg0: i32, %arg1: memref<8x32xf32, #tpu.memory_space<vmem>>, %arg2: memref<32x16xf32, #tpu.memory_space<vmem>>, %arg3: memref<1x16xf32, #tpu.memory_space<vmem>>, %arg4: memref<8x16xf32, #tpu.memory_space<vmem>>) attributes {dimension_semantics = [#tpu.dimension_semantics<parallel>], iteration_bounds = array<i64: 1>, scalar_prefetch = 0 : i64, scratch_operands = 0 : i64, tpu.core_type = #tpu.core_type<tc>, window_params = [{transform_indices = @transform_0, window_bounds = array<i64: 8, 32>}, {pipeline_mode = #tpu.pipeline_mode<synchronous>, transform_indices = @transform_1, window_bounds = array<i64: 32, 16>}, {pipeline_mode = #tpu.pipeline_mode<synchronous>, transform_indices = @transform_2, window_bounds = array<i64: 1, 16>}, {transform_indices = @transform_3, window_bounds = array<i64: 8, 16>}]} {
    %c0 = arith.constant 0 : index
    %c0_0 = arith.constant 0 : index
    %0 = vector.load %arg1[%c0, %c0_0] : memref<8x32xf32, #tpu.memory_space<vmem>>, vector<8x32xf32>
    %c0_1 = arith.constant 0 : index
    %c0_2 = arith.constant 0 : index
    %1 = vector.load %arg2[%c0_1, %c0_2] : memref<32x16xf32, #tpu.memory_space<vmem>>, vector<32x16xf32>
    %cst = arith.constant dense<0.000000e+00> : vector<8x16xf32>
    %2 = tpu.matmul %0, %1, %cst {dimension_numbers = #tpu.dot_dimension_numbers<[1], [0], [0], [1], [0, 0, 1, 1], [], []>} : vector<8x32xf32>, vector<32x16xf32>, vector<8x16xf32> -> vector<8x16xf32>
    %c0_3 = arith.constant 0 : index
    %c0_4 = arith.constant 0 : index
    %3 = vector.load %arg3[%c0_3, %c0_4] : memref<1x16xf32, #tpu.memory_space<vmem>>, vector<1x16xf32>
    %4 = vector.broadcast %3 : vector<1x16xf32> to vector<8x16xf32>
    %5 = arith.addf %2, %4 : vector<8x16xf32>
    %6 = arith.negf %5 : vector<8x16xf32>
    %7 = math.exp %6 : vector<8x16xf32>
    %cst_5 = arith.constant 1.000000e+00 : f32
    %8 = vector.broadcast %cst_5 : f32 to vector<8x16xf32>
    %9 = arith.addf %8, %7 : vector<8x16xf32>
    %10 = arith.divf %8, %9 : vector<8x16xf32>
    %c0_6 = arith.constant 0 : index
    %c0_7 = arith.constant 0 : index
    %11 = vector.load %arg4[%c0_6, %c0_7] : memref<8x16xf32, #tpu.memory_space<vmem>>, vector<8x16xf32>
    tpu.vector_store %arg4[%c0_6, %c0_7], %10 {strides = array<i32>} : memref<8x16xf32, #tpu.memory_space<vmem>>, vector<8x16xf32>,
    return
  }
  func.func @transform_0(%arg0: i32) -> (i32, i32) {
    %c0_i32 = arith.constant 0 : i32
    %c0_i32_0 = arith.constant 0 : i32
    return %arg0, %c0_i32 : i32, i32
  }
  func.func @transform_1(%arg0: i32) -> (i32, i32) {
    %c0_i32 = arith.constant 0 : i32
    %c0_i32_0 = arith.constant 0 : i32
    %c0_i32_1 = arith.constant 0 : i32
    return %c0_i32, %c0_i32_0 : i32, i32
  }
  func.func @transform_2(%arg0: i32) -> (i32, i32) {
    %c0_i32 = arith.constant 0 : i32
    %c0_i32_0 = arith.constant 0 : i32
    %c0_i32_1 = arith.constant 0 : i32
    return %c0_i32, %c0_i32_0 : i32, i32
  }
  func.func @transform_3(%arg0: i32) -> (i32, i32) {
    %c0_i32 = arith.constant 0 : i32
    %c0_i32_0 = arith.constant 0 : i32
    return %arg0, %c0_i32 : i32, i32
  }
}

</mosaic_0001>

<bundles_post_ra>
// kernel: _forward.1
= control target key start
LH: loop header
LB: loop body
LE: loop exit
PB: predicated region body
PF: predicated region fallthrough
CT: control target
= control target key end

     0   :  { %v171_v1 = vmov 0.0   ;;  %vm172_vm0 = vmmov 0   ;;  %s215_s0 = inlined_call_operand.vmem [shape: f32[8,32], index: 0, kind: input, shape index: {}]   ;;  %s216_s1 = inlined_call_operand.vmem [shape: f32[32,16], index: 1, kind: input, shape index: {}]   ;;  %s217_s2 = inlined_call_operand.vmem [shape: f32[1,16], index: 2, kind: input, shape index: {}]   ;;  %s218_s3 = inlined_call_operand.hbm [shape: f32[8,16], index: 3, kind: output, shape index: {}]  }
   0x1   :  { %v19_v0 = vld [vmem:[%s216_s1 + $0x18] sm:$0xff]  ;;  %131 = vmatprep.subr.mxu0 %v171_v1  ;;  %v18_v2 = vld [vmem:[%s216_s1 + $0x10] sm:$0xff]  ;;  %139 = vmatprep.mubr.msk.f32.mxu0 %vm172_vm0, %v171_v1 }
   0x2   :  { %132 = vmatpush3.msra.mxu0 %v19_v0 }
   0x3   :  { %8 = vsyncpa [#allocation3], 0  ;;  %133 = vmatprep.subr.mxu0 %v171_v1  ;;  %v17_v3 = vld [vmem:[%s216_s1 + $0x8] sm:$0xff]  ;;  %v16_v4 = vld [vmem:[%s216_s1] sm:$0xff]  ;;  %vm27_vm1 = vcmask 261120   ;;  %s173_s1 = smov [#allocation2]  }
   0x4   :  { %134 = vmatpush3.msra.mxu0 %v18_v2  ;;  %v15_v5 = vld [vmem:[%s215_s0] sm:$0xff]  ;;  %s115_s24 = sshll.u32 %s173_s1, 4  ;;  %vm107_vm2 = vcmask 130048   ;;  %s116_s24 = int_to_ptr.vmem [resolvable:$true] %s115_s24 }
   0x5   :  { %135 = vmatprep.subr.mxu0 %v171_v1  ;;  %v123_v6 = vld [vmem:[%s217_s2] ss:$0 sm:$0xff]  ;;  %s149_s0 = scalar_lea.vmem %s116_s24, 128  ;;  %p154_p1 = scmp.lt.s32.totalorder %s116_s24, %s116_s24 }
   0x6   :  { %136 = vmatpush3.msra.mxu0 %v17_v3  ;;  %p150_p0 = scmp.ne.s32.totalorder %s116_s24, %s149_s0  ;;  %p155_p2 = scmp.lt.s32.totalorder %s149_s0, %s149_s0 }
   0x7   :  { %137 = vmatprep.subr.mxu0 %v171_v1 }
   0x8   :  { %138 = vmatpush3.msra.mxu0 %v16_v4  ;;  %p156_p3 = por %p155_p2, %p154_p1 }
   0x9   :  { %140 = vmatmul.mubr.msk.f32.vlgmr.msra.gmra.mxu0 %vm27_vm1, %v15_v5 }
   0xa   :  { %p157_p4 = pnand %p156_p3, %p150_p0 }
  0xc9   :  { %v97_v7 = vpop.f32.mrf.mxu0 }
  0xca   :  { %v98_v8 = vadd.f32 %v123_v6, %v97_v7 }
  0xcb   :  { %v141_v9 = vpop.f32.mrf.mxu0 }
  0xcc   :  { %v125_v10 = vmul.f32 -1.442695, %v98_v8 }
  0xce   :  { %145 = vpow2.f32 %v125_v10 }
  0xdb   :  { %v146_v11 = vpop.eup %145 }
  0xdc   :  { %v104_v12 = vadd.f32 1.0, %v146_v11 }
  0xde   :  { %147 = vrcp.f32 %v104_v12 }
  0xeb   :  { %v148_v13 = vpop.eup %147 }
  0xec   :  { %108 = vst.msk [vmem:[#allocation2] sm:$0xff] %vm107_vm2, %v148_v13 }
  0xed   :  { %160 = shalt.err (!%p157_p4)
}
  0xee   :  { %118 = dma.vmem_to_hbm [thread:$0]  %s116_s24, 128, %s218_s3, [#allocation3]  }
  0xef   :  { %169 = dma.done.wait [#allocation3], 128  }
  0xf0   :  { %170 = vsyncadd [#allocation3], 4294967168 }
  0xf1   :  { %122 = vsyncpa [#allocation3], 1 }

// kernel: _forward.1
= control target key start
LH: loop header
LB: loop body
LE: loop exit
PB: predicated region body
PF: predicated region fallthrough
CT: control target
= control target key end

     0   :  { %v171_v1 = vmov 0.0   ;;  %vm172_vm0 = vmmov 0   ;;  %s215_s0 = inlined_call_operand.vmem [shape: f32[8,32], index: 0, kind: input, shape index: {}]   ;;  %s216_s1 = inlined_call_operand.vmem [shape: f32[32,16], index: 1, kind: input, shape index: {}]   ;;  %s217_s2 = inlined_call_operand.vmem [shape: f32[1,16], index: 2, kind: input, shape index: {}]   ;;  %s218_s3 = inlined_call_operand.hbm [shape: f32[8,16], index: 3, kind: output, shape index: {}]  }
   0x1   :  { %v19_v0 = vld [vmem:[%s216_s1 + $0x18] sm:$0xff]  ;;  %131 = vmatprep.subr.mxu0 %v171_v1  ;;  %v18_v2 = vld [vmem:[%s216_s1 + $0x10] sm:$0xff]  ;;  %139 = vmatprep.mubr.msk.f32.mxu0 %vm172_vm0, %v171_v1 }
   0x2   :  { %132 = vmatpush3.msra.mxu0 %v19_v0 }
   0x3   :  { %8 = vsyncpa [#allocation3], 0  ;;  %133 = vmatprep.subr.mxu0 %v171_v1  ;;  %v17_v3 = vld [vmem:[%s216_s1 + $0x8] sm:$0xff]  ;;  %v16_v4 = vld [vmem:[%s216_s1] sm:$0xff]  ;;  %vm27_vm1 = vcmask 261120   ;;  %s173_s1 = smov [#allocation2]  }
   0x4   :  { %134 = vmatpush3.msra.mxu0 %v18_v2  ;;  %v15_v5 = vld [vmem:[%s215_s0] sm:$0xff]  ;;  %s115_s24 = sshll.u32 %s173_s1, 4  ;;  %vm107_vm2 = vcmask 130048   ;;  %s116_s24 = int_to_ptr.vmem [resolvable:$true] %s115_s24 }
   0x5   :  { %135 = vmatprep.subr.mxu0 %v171_v1  ;;  %v123_v6 = vld [vmem:[%s217_s2] ss:$0 sm:$0xff]  ;;  %s149_s0 = scalar_lea.vmem %s116_s24, 128  ;;  %p154_p1 = scmp.lt.s32.totalorder %s116_s24, %s116_s24 }
   0x6   :  { %136 = vmatpush3.msra.mxu0 %v17_v3  ;;  %p150_p0 = scmp.ne.s32.totalorder %s116_s24, %s149_s0  ;;  %p155_p2 = scmp.lt.s32.totalorder %s149_s0, %s149_s0 }
   0x7   :  { %137 = vmatprep.subr.mxu0 %v171_v1 }
   0x8   :  { %138 = vmatpush3.msra.mxu0 %v16_v4  ;;  %p156_p3 = por %p155_p2, %p154_p1 }
   0x9   :  { %140 = vmatmul.mubr.msk.f32.vlgmr.msra.gmra.mxu0 %vm27_vm1, %v15_v5 }
   0xa   :  { %p157_p4 = pnand %p156_p3, %p150_p0 }
  0xc9   :  { %v97_v7 = vpop.f32.mrf.mxu0 }
  0xca   :  { %v98_v8 = vadd.f32 %v123_v6, %v97_v7 }
  0xcb   :  { %v141_v9 = vpop.f32.mrf.mxu0 }
  0xcc   :  { %v125_v10 = vmul.f32 -1.442695, %v98_v8 }
  0xce   :  { %145 = vpow2.f32 %v125_v10 }
  0xdb   :  { %v146_v11 = vpop.eup %145 }
  0xdc   :  { %v104_v12 = vadd.f32 1.0, %v146_v11 }
  0xde   :  { %147 = vrcp.f32 %v104_v12 }
  0xeb   :  { %v148_v13 = vpop.eup %147 }
  0xec   :  { %108 = vst.msk [vmem:[#allocation2] sm:$0xff] %vm107_vm2, %v148_v13 }
  0xed   :  { %160 = shalt.err (!%p157_p4)
}
  0xee   :  { %118 = dma.vmem_to_hbm [thread:$0]  %s116_s24, 128, %s218_s3, [#allocation3]  }
  0xef   :  { %169 = dma.done.wait [#allocation3], 128  }
  0xf0   :  { %170 = vsyncadd [#allocation3], 4294967168 }
  0xf1   :  { %122 = vsyncpa [#allocation3], 1 }

</bundles_post_ra>
